<compile_context>
chip_gen: v7x
topology: tpu7x:2x2x1
jax: 0.10.0
libtpu: 0.0.40
codegen_flags: <defaults>
</compile_context>

<pallas_src>
import functools

import jax
import jax.numpy as jnp
from jax.experimental import pallas as pl
from jax.experimental.pallas import tpu as pltpu

ACTION_SIZE = 2
STATE_SIZE = 4
HIDDEN = 32


def _round_up(n, m):
    return ((n + m - 1) // m) * m


def _choose_tile_b(B, tile_b):
    """Pick the lane-tile along the batch axis.

    Large tiles amortize per-grid-step overhead, but when the batch allows it we cap the tile so
    the grid has at least 2 steps -> the 'parallel' axis feeds both TensorCores on v7x.
    """
    b_min = _round_up(B, 128)
    if b_min <= 128:
        return 128
    half = _round_up(-(-b_min // 2), 128)          # ceil(b_min/2) rounded up to 128
    return max(128, min(tile_b, half))


def policy_net_kernel(x_ref,
                      w1_ref, b1_ref,
                      w2_ref, b2_ref,
                      w3_ref, b3_ref,
                      w4_ref, b4_ref,
                      out_ref, *, compute_dtype, approx_recip):
    """One batch tile: x_ref is (STATE_SIZE, TB) f32, out_ref is (ACTION_SIZE, TB) f32."""
    cd = compute_dtype
    # Cast to the matmul operand dtype inside the kernel (keeps the HBM x stream in plain f32 and
    # removes the wrapper-side cast pass).  For compute_dtype=f32 this is a no-op.
    x = x_ref[...].astype(cd)                                            # (4, TB)

    # Linear(4, 32) + ReLU.  K=4 barely touches the MXU, but the kernel is bound by the x/out
    # HBM stream, so the dot is accepted as-is (no K padding, no layer splitting).
    h = jnp.dot(w1_ref[...], x, preferred_element_type=jnp.float32)     # (32, TB) f32
    h = jnp.maximum(h + b1_ref[...], 0.0)

    # Linear(32, 32) + ReLU
    h = jnp.dot(w2_ref[...], h.astype(cd), preferred_element_type=jnp.float32)
    h = jnp.maximum(h + b2_ref[...], 0.0)

    # Linear(32, 32) + ReLU
    h = jnp.dot(w3_ref[...], h.astype(cd), preferred_element_type=jnp.float32)
    h = jnp.maximum(h + b3_ref[...], 0.0)

    # Linear(32, 2)
    logits = jnp.dot(w4_ref[...], h.astype(cd), preferred_element_type=jnp.float32)
    logits = logits + b4_ref[...]                                        # (2, TB) f32

    # Closed-form 2-class softmax (== nn.Softmax over the action dim).  Overflow of exp to +inf
    # saturates cleanly to (1, 0); no NaN, no cross-lane reductions.
    l0 = logits[0:1, :]
    l1 = logits[1:2, :]
    denom = 1.0 + jnp.exp(l0 - l1)
    if approx_recip:
        p1 = pl.reciprocal(denom, approx=True)     # EUP slot; bf16-operand path only
    else:
        p1 = 1.0 / denom                           # exact: f32 PyTorch-parity path
    p0 = 1.0 - p1                                  # p0 + p1 == 1 by construction

    # Single fused store of the whole (2, TB) tile.
    out_ref[...] = jnp.concatenate([p0, p1], axis=0).astype(out_ref.dtype)


def policy_net_forward_fm(x_fm, params, *, tile_b=4096, compute_dtype=jnp.bfloat16):
    """Fast path.  x_fm: (STATE_SIZE, B) float32, feature-major.  Returns (ACTION_SIZE, B) f32.

    Keep the RL loop's state buffer in this layout to avoid any wrapper-side transpose passes.
    """
    S, B = x_fm.shape
    assert S == STATE_SIZE
    assert tile_b % 128 == 0 and tile_b > 0

    TB = _choose_tile_b(B, tile_b)
    Bp = _round_up(B, TB)
    if Bp != B:
        # Tail padding only when needed; padded columns are computed and then discarded.
        x_fm = jnp.pad(x_fm, ((0, 0), (0, Bp - B)))

    cd = compute_dtype
    w1 = params["w1"].astype(cd); b1 = params["b1"].astype(jnp.float32)
    w2 = params["w2"].astype(cd); b2 = params["b2"].astype(jnp.float32)
    w3 = params["w3"].astype(cd); b3 = params["b3"].astype(jnp.float32)
    w4 = params["w4"].astype(cd); b4 = params["b4"].astype(jnp.float32)

    def resident(shape):
        # Constant index_map -> same block every grid step -> stays resident in VMEM.
        return pl.BlockSpec(shape, lambda i: (0, 0))

    kernel = functools.partial(
        policy_net_kernel,
        compute_dtype=cd,
        approx_recip=(jnp.dtype(cd) != jnp.dtype(jnp.float32)),
    )

    out = pl.pallas_call(
        kernel,
        out_shape=jax.ShapeDtypeStruct((ACTION_SIZE, Bp), jnp.float32),
        grid=(Bp // TB,),
        in_specs=[
            # Streamed x tile (auto double-buffered).  If small-B latency ever matters and TB
            # cannot grow, add pipeline_mode=pl.Buffered(3) here and on out_specs.
            pl.BlockSpec((STATE_SIZE, TB), lambda i: (0, i)),
            resident((HIDDEN, STATE_SIZE)), resident((HIDDEN, 1)),
            resident((HIDDEN, HIDDEN)),     resident((HIDDEN, 1)),
            resident((HIDDEN, HIDDEN)),     resident((HIDDEN, 1)),
            resident((ACTION_SIZE, HIDDEN)), resident((ACTION_SIZE, 1)),
        ],
        out_specs=pl.BlockSpec((ACTION_SIZE, TB), lambda i: (0, i)),
        compiler_params=pltpu.CompilerParams(
            dimension_semantics=("parallel",)),      # batch tiles across TCs on v7x
    )(x_fm, w1, b1, w2, b2, w3, b3, w4, b4)

    return out if Bp == B else out[:, :B]


def policy_net_forward(x, params, **kwargs):
    """PyTorch-layout convenience wrapper: x is (B, STATE_SIZE) f32, returns (B, ACTION_SIZE) f32.

    Note: the two transposes here are extra XLA passes over the activation stream; performance-
    sensitive callers should keep states feature-major and call policy_net_forward_fm directly.
    """
    return policy_net_forward_fm(x.T, params, **kwargs).T


def init_params(key):
    """PyTorch nn.Linear-style init; weights kept in PyTorch (out_features, in_features) order."""
    def linear_init(k, fan_in, fan_out):
        kw, kb = jax.random.split(k)
        bound = 1.0 / jnp.sqrt(jnp.float32(fan_in))
        w = jax.random.uniform(kw, (fan_out, fan_in), jnp.float32, -bound, bound)
        b = jax.random.uniform(kb, (fan_out, 1), jnp.float32, -bound, bound)
        return w, b

    k1, k2, k3, k4 = jax.random.split(key, 4)
    w1, b1 = linear_init(k1, STATE_SIZE, HIDDEN)
    w2, b2 = linear_init(k2, HIDDEN, HIDDEN)
    w3, b3 = linear_init(k3, HIDDEN, HIDDEN)
    w4, b4 = linear_init(k4, HIDDEN, ACTION_SIZE)
    return {"w1": w1, "b1": b1, "w2": w2, "b2": b2,
            "w3": w3, "b3": b3, "w4": w4, "b4": b4}


def policy_net_ref(x, p, compute_dtype=jnp.bfloat16):
    """Pure-JAX reference with the same dtype policy (matmul operands cast, f32 accumulation)."""
    cd = compute_dtype

    def dense(h, w, b):
        return jnp.dot(h.astype(cd), w.astype(cd).T,
                       preferred_element_type=jnp.float32) + b[:, 0]

    h = jnp.maximum(dense(x, p["w1"], p["b1"]), 0.0)
    h = jnp.maximum(dense(h, p["w2"], p["b2"]), 0.0)
    h = jnp.maximum(dense(h, p["w3"], p["b3"]), 0.0)
    logits = dense(h, p["w4"], p["b4"])
    return jax.nn.softmax(logits, axis=-1)


if __name__ == "__main__":
    key = jax.random.PRNGKey(0)
    kp, kx1, kx2 = jax.random.split(key, 3)
    params = init_params(kp)

    # Small CartPole-like batch of states (batch-major, as PyTorch would pass them).
    B = 8
    x = jax.random.normal(kx1, (B, STATE_SIZE), jnp.float32)

    # Default path: bf16 matmul operands, f32 elementwise/softmax (v6e/v7x recommendation).
    out = jax.block_until_ready(policy_net_forward(x, params))
    ref = policy_net_ref(x, params)
    assert out.shape == (B, ACTION_SIZE)
    assert bool(jnp.allclose(jnp.sum(out, axis=-1), 1.0, atol=1e-4))
    assert bool(jnp.allclose(out, ref, atol=2e-3, rtol=0.0))

    # Full-f32 parity path (exact reciprocal in the softmax on this path).
    out_f32 = jax.block_until_ready(policy_net_forward(x, params, compute_dtype=jnp.float32))
    ref_f32 = policy_net_ref(x, params, compute_dtype=jnp.float32)
    assert bool(jnp.allclose(out_f32, ref_f32, atol=2e-3, rtol=0.0))

    # Larger ragged batch through the fast feature-major API: exercises the >=2-step grid
    # (both TensorCores on v7x), tail padding, and the fused epilogue store.
    B2 = 1000
    x2_fm = jax.random.normal(kx2, (STATE_SIZE, B2), jnp.float32)
    out2 = jax.block_until_ready(policy_net_forward_fm(x2_fm, params))
    ref2 = policy_net_ref(x2_fm.T, params)
    assert out2.shape == (ACTION_SIZE, B2)
    assert bool(jnp.allclose(out2.T, ref2, atol=2e-3, rtol=0.0))

    print("KERNEL_OK")
</pallas_src>

<mosaic_0001>
module attributes {stable_mosaic.version = 11 : i64} {
  func.func @policy_net_kernel(%arg0: i32, %arg1: memref<4x128xf32, #tpu.memory_space<vmem>>, %arg2: memref<32x4xbf16, #tpu.memory_space<vmem>>, %arg3: memref<32x1xf32, #tpu.memory_space<vmem>>, %arg4: memref<32x32xbf16, #tpu.memory_space<vmem>>, %arg5: memref<32x1xf32, #tpu.memory_space<vmem>>, %arg6: memref<32x32xbf16, #tpu.memory_space<vmem>>, %arg7: memref<32x1xf32, #tpu.memory_space<vmem>>, %arg8: memref<2x32xbf16, #tpu.memory_space<vmem>>, %arg9: memref<2x1xf32, #tpu.memory_space<vmem>>, %arg10: memref<2x128xf32, #tpu.memory_space<vmem>>) attributes {dimension_semantics = [#tpu.dimension_semantics<parallel>], iteration_bounds = array<i64: 1>, scalar_prefetch = 0 : i64, scratch_operands = 0 : i64, tpu.core_type = #tpu.core_type<tc>, window_params = [{transform_indices = @transform_0, window_bounds = array<i64: 4, 128>}, {pipeline_mode = #tpu.pipeline_mode<synchronous>, transform_indices = @transform_1, window_bounds = array<i64: 32, 4>}, {pipeline_mode = #tpu.pipeline_mode<synchronous>, transform_indices = @transform_2, window_bounds = array<i64: 32, 1>}, {pipeline_mode = #tpu.pipeline_mode<synchronous>, transform_indices = @transform_3, window_bounds = array<i64: 32, 32>}, {pipeline_mode = #tpu.pipeline_mode<synchronous>, transform_indices = @transform_4, window_bounds = array<i64: 32, 1>}, {pipeline_mode = #tpu.pipeline_mode<synchronous>, transform_indices = @transform_5, window_bounds = array<i64: 32, 32>}, {pipeline_mode = #tpu.pipeline_mode<synchronous>, transform_indices = @transform_6, window_bounds = array<i64: 32, 1>}, {pipeline_mode = #tpu.pipeline_mode<synchronous>, transform_indices = @transform_7, window_bounds = array<i64: 2, 32>}, {pipeline_mode = #tpu.pipeline_mode<synchronous>, transform_indices = @transform_8, window_bounds = array<i64: 2, 1>}, {transform_indices = @transform_9, window_bounds = array<i64: 2, 128>}]} {
    %c0 = arith.constant 0 : index
    %c0_0 = arith.constant 0 : index
    %0 = vector.load %arg1[%c0, %c0_0] : memref<4x128xf32, #tpu.memory_space<vmem>>, vector<4x128xf32>
    %1 = arith.truncf %0 : vector<4x128xf32> to vector<4x128xbf16>
    %c0_1 = arith.constant 0 : index
    %c0_2 = arith.constant 0 : index
    %2 = vector.load %arg2[%c0_1, %c0_2] : memref<32x4xbf16, #tpu.memory_space<vmem>>, vector<32x4xbf16>
    %cst = arith.constant dense<0.000000e+00> : vector<32x128xf32>
    %3 = tpu.matmul %2, %1, %cst {dimension_numbers = #tpu.dot_dimension_numbers<[1], [0], [0], [1], [0, 0, 1, 1], [], []>} : vector<32x4xbf16>, vector<4x128xbf16>, vector<32x128xf32> -> vector<32x128xf32>
    %c0_3 = arith.constant 0 : index
    %c0_4 = arith.constant 0 : index
    %4 = vector.load %arg3[%c0_3, %c0_4] : memref<32x1xf32, #tpu.memory_space<vmem>>, vector<32x1xf32>
    %5 = vector.broadcast %4 : vector<32x1xf32> to vector<32x128xf32>
    %6 = arith.addf %3, %5 : vector<32x128xf32>
    %cst_5 = arith.constant 0.000000e+00 : f32
    %7 = vector.broadcast %cst_5 : f32 to vector<32x128xf32>
    %8 = arith.maximumf %6, %7 : vector<32x128xf32>
    %c0_6 = arith.constant 0 : index
    %c0_7 = arith.constant 0 : index
    %9 = vector.load %arg4[%c0_6, %c0_7] : memref<32x32xbf16, #tpu.memory_space<vmem>>, vector<32x32xbf16>
    %10 = arith.truncf %8 : vector<32x128xf32> to vector<32x128xbf16>
    %cst_8 = arith.constant dense<0.000000e+00> : vector<32x128xf32>
    %11 = tpu.matmul %9, %10, %cst_8 {dimension_numbers = #tpu.dot_dimension_numbers<[1], [0], [0], [1], [0, 0, 1, 1], [], []>} : vector<32x32xbf16>, vector<32x128xbf16>, vector<32x128xf32> -> vector<32x128xf32>
    %c0_9 = arith.constant 0 : index
    %c0_10 = arith.constant 0 : index
    %12 = vector.load %arg5[%c0_9, %c0_10] : memref<32x1xf32, #tpu.memory_space<vmem>>, vector<32x1xf32>
    %13 = vector.broadcast %12 : vector<32x1xf32> to vector<32x128xf32>
    %14 = arith.addf %11, %13 : vector<32x128xf32>
    %cst_11 = arith.constant 0.000000e+00 : f32
    %15 = vector.broadcast %cst_11 : f32 to vector<32x128xf32>
    %16 = arith.maximumf %14, %15 : vector<32x128xf32>
    %c0_12 = arith.constant 0 : index
    %c0_13 = arith.constant 0 : index
    %17 = vector.load %arg6[%c0_12, %c0_13] : memref<32x32xbf16, #tpu.memory_space<vmem>>, vector<32x32xbf16>
    %18 = arith.truncf %16 : vector<32x128xf32> to vector<32x128xbf16>
    %cst_14 = arith.constant dense<0.000000e+00> : vector<32x128xf32>
    %19 = tpu.matmul %17, %18, %cst_14 {dimension_numbers = #tpu.dot_dimension_numbers<[1], [0], [0], [1], [0, 0, 1, 1], [], []>} : vector<32x32xbf16>, vector<32x128xbf16>, vector<32x128xf32> -> vector<32x128xf32>
    %c0_15 = arith.constant 0 : index
    %c0_16 = arith.constant 0 : index
    %20 = vector.load %arg7[%c0_15, %c0_16] : memref<32x1xf32, #tpu.memory_space<vmem>>, vector<32x1xf32>
    %21 = vector.broadcast %20 : vector<32x1xf32> to vector<32x128xf32>
    %22 = arith.addf %19, %21 : vector<32x128xf32>
    %cst_17 = arith.constant 0.000000e+00 : f32
    %23 = vector.broadcast %cst_17 : f32 to vector<32x128xf32>
    %24 = arith.maximumf %22, %23 : vector<32x128xf32>
    %c0_18 = arith.constant 0 : index
    %c0_19 = arith.constant 0 : index
    %25 = vector.load %arg8[%c0_18, %c0_19] : memref<2x32xbf16, #tpu.memory_space<vmem>>, vector<2x32xbf16>
    %26 = arith.truncf %24 : vector<32x128xf32> to vector<32x128xbf16>
    %cst_20 = arith.constant dense<0.000000e+00> : vector<2x128xf32>
    %27 = tpu.matmul %25, %26, %cst_20 {dimension_numbers = #tpu.dot_dimension_numbers<[1], [0], [0], [1], [0, 0, 1, 1], [], []>} : vector<2x32xbf16>, vector<32x128xbf16>, vector<2x128xf32> -> vector<2x128xf32>
    %c0_21 = arith.constant 0 : index
    %c0_22 = arith.constant 0 : index
    %28 = vector.load %arg9[%c0_21, %c0_22] : memref<2x1xf32, #tpu.memory_space<vmem>>, vector<2x1xf32>
    %29 = vector.broadcast %28 : vector<2x1xf32> to vector<2x128xf32>
    %30 = arith.addf %27, %29 : vector<2x128xf32>
    %31 = vector.extract_strided_slice %30 {offsets = [0, 0], sizes = [1, 128], strides = [1, 1]} : vector<2x128xf32> to vector<1x128xf32>
    %32 = vector.extract_strided_slice %30 {offsets = [1, 0], sizes = [1, 128], strides = [1, 1]} : vector<2x128xf32> to vector<1x128xf32>
    %33 = arith.subf %31, %32 : vector<1x128xf32>
    %34 = math.exp %33 : vector<1x128xf32>
    %cst_23 = arith.constant 1.000000e+00 : f32
    %35 = vector.broadcast %cst_23 : f32 to vector<1x128xf32>
    %36 = arith.addf %35, %34 : vector<1x128xf32>
    %37 = tpu.reciprocal %36 {approx = true} : vector<1x128xf32> -> vector<1x128xf32>
    %cst_24 = arith.constant 1.000000e+00 : f32
    %38 = vector.broadcast %cst_24 : f32 to vector<1x128xf32>
    %39 = arith.subf %38, %37 : vector<1x128xf32>
    %40 = tpu.concatenate %39, %37 in 0 : vector<1x128xf32>, vector<1x128xf32> -> vector<2x128xf32>
    %c0_25 = arith.constant 0 : index
    %c0_26 = arith.constant 0 : index
    %41 = vector.load %arg10[%c0_25, %c0_26] : memref<2x128xf32, #tpu.memory_space<vmem>>, vector<2x128xf32>
    tpu.vector_store %arg10[%c0_25, %c0_26], %40 {strides = array<i32>} : memref<2x128xf32, #tpu.memory_space<vmem>>, vector<2x128xf32>,
    return
  }
  func.func @transform_0(%arg0: i32) -> (i32, i32) {
    %c0_i32 = arith.constant 0 : i32
    %c0_i32_0 = arith.constant 0 : i32
    return %c0_i32, %arg0 : i32, i32
  }
  func.func @transform_1(%arg0: i32) -> (i32, i32) {
    %c0_i32 = arith.constant 0 : i32
    %c0_i32_0 = arith.constant 0 : i32
    %c0_i32_1 = arith.constant 0 : i32
    return %c0_i32, %c0_i32_0 : i32, i32
  }
  func.func @transform_2(%arg0: i32) -> (i32, i32) {
    %c0_i32 = arith.constant 0 : i32
    %c0_i32_0 = arith.constant 0 : i32
    %c0_i32_1 = arith.constant 0 : i32
    return %c0_i32, %c0_i32_0 : i32, i32
  }
  func.func @transform_3(%arg0: i32) -> (i32, i32) {
    %c0_i32 = arith.constant 0 : i32
    %c0_i32_0 = arith.constant 0 : i32
    %c0_i32_1 = arith.constant 0 : i32
    return %c0_i32, %c0_i32_0 : i32, i32
  }
  func.func @transform_4(%arg0: i32) -> (i32, i32) {
    %c0_i32 = arith.constant 0 : i32
    %c0_i32_0 = arith.constant 0 : i32
    %c0_i32_1 = arith.constant 0 : i32
    return %c0_i32, %c0_i32_0 : i32, i32
  }
  func.func @transform_5(%arg0: i32) -> (i32, i32) {
    %c0_i32 = arith.constant 0 : i32
    %c0_i32_0 = arith.constant 0 : i32
    %c0_i32_1 = arith.constant 0 : i32
    return %c0_i32, %c0_i32_0 : i32, i32
  }
  func.func @transform_6(%arg0: i32) -> (i32, i32) {
    %c0_i32 = arith.constant 0 : i32
    %c0_i32_0 = arith.constant 0 : i32
    %c0_i32_1 = arith.constant 0 : i32
    return %c0_i32, %c0_i32_0 : i32, i32
  }
  func.func @transform_7(%arg0: i32) -> (i32, i32) {
    %c0_i32 = arith.constant 0 : i32
    %c0_i32_0 = arith.constant 0 : i32
    %c0_i32_1 = arith.constant 0 : i32
    return %c0_i32, %c0_i32_0 : i32, i32
  }
  func.func @transform_8(%arg0: i32) -> (i32, i32) {
    %c0_i32 = arith.constant 0 : i32
    %c0_i32_0 = arith.constant 0 : i32
    %c0_i32_1 = arith.constant 0 : i32
    return %c0_i32, %c0_i32_0 : i32, i32
  }
  func.func @transform_9(%arg0: i32) -> (i32, i32) {
    %c0_i32 = arith.constant 0 : i32
    %c0_i32_0 = arith.constant 0 : i32
    return %c0_i32, %arg0 : i32, i32
  }
}

</mosaic_0001>

<bundles_post_ra>
// kernel: tpu_custom_call.1
= control target key start
LH: loop header
LB: loop body
LE: loop exit
PB: predicated region body
PF: predicated region fallthrough
CT: control target
= control target key end

     0   :  { %vm81_vm0 = vcmask 1041408   ;;  %vm74_vm1 = vcmask 31744   ;;  %v516_v6 = vmov 0   ;;  %s650_s0 = inlined_call_operand.vmem [shape: f32[4,128], index: 0, kind: input, shape index: {}]   ;;  %s651_s1 = inlined_call_operand.vmem [shape: bf16[32,4], index: 1, kind: input, shape index: {}]   ;;  %s652_s2 = inlined_call_operand.vmem [shape: f32[32,1], index: 2, kind: input, shape index: {}]   ;;  %s653_s3 = inlined_call_operand.vmem [shape: bf16[32,32], index: 3, kind: input, shape index: {}]   ;;  %s654_s4 = inlined_call_operand.vmem [shape: f32[32,1], index: 4, kind: input, shape index: {}]   ;;  %s655_s5 = inlined_call_operand.vmem [shape: bf16[32,32], index: 5, kind: input, shape index: {}]   ;;  %s656_s6 = inlined_call_operand.vmem [shape: f32[32,1], index: 6, kind: input, shape index: {}]   ;;  %s657_s7 = inlined_call_operand.vmem [shape: bf16[2,32], index: 7, kind: input, shape index: {}]   ;;  %s658_s8 = inlined_call_operand.vmem [shape: f32[2,1], index: 8, kind: input, shape index: {}]   ;;  %s659_s9 = inlined_call_operand.hbm [shape: f32[2,128], index: 9, kind: output, shape index: {}]  }
   0x1   :  { %v34_v0 = vld [vmem:[%s650_s0] sm:$0xf]  ;;  %v483_v5 = vld [vmem:[%s651_s1 + $0x8] sm:$0xff]   ;;  %480 = vset.pattern.permute.xlu0 %v516_v6  ;;  %v42_v7 = vld [vmem:[%s652_s2 + $0x10] sm:$0xff]  ;;  %481 = vset.pattern.permute.xlu1 %v516_v6 }
   0x2   :  { %v482_v1 = vld [vmem:[%s651_s1] sm:$0xff]   ;;  %v35_v2 = vpack.c.bf16 %v34_v0, %v34_v0  ;;  %v41_v8 = vld [vmem:[%s652_s2 + $0x8] sm:$0xff]  ;;  %56 = vperm.xlu1 %481, %v42_v7   ;;  %v43_v9 = vld [vmem:[%s652_s2 + $0x18] sm:$0xff] }
   0x3   :  { %447 = vmatprep.mubr.msk.bf16.mxu0 %vm74_vm1, %v482_v1  ;;  %v40_v3 = vld [vmem:[%s652_s2] sm:$0xff] }
   0x4   :  { %475 = vmatprep.subr.msk.bf16.mxu0 %vm81_vm0, %v35_v2  ;;  %v83_v4 = vsel %vm81_vm0, %v35_v2, 0  ;;  %46 = vperm.xlu0 %480, %v40_v3   ;;  %v144_v10 = vld [vmem:[%s654_s4] sm:$0xff] }
   0x5   :  { %446 = vmatpush3.bf16.msra.mxu0 %v83_v4 }
   0x8   :  { %448 = vmatmul.mubr.msk.bf16.vlgmr.msra.gmra.mrb[0].mxu0 %vm74_vm1, %v483_v5  ;;  %51 = vperm.xlu0 %480, %v41_v8  }
   0x9   :  { %14 = vsyncpa [#allocation3], 0  ;;  %61 = vperm.xlu1 %481, %v43_v9   ;;  %v145_v11 = vld [vmem:[%s654_s4 + $0x8] sm:$0xff]  ;;  %v146_v12 = vld [vmem:[%s654_s4 + $0x10] sm:$0xff]  ;;  %vm178_vm2 = vcmask 261120   ;;  %v517_v59 = vmov 0.0  }
   0xa   :  { %v147_v13 = vld [vmem:[%s654_s4 + $0x18] sm:$0xff]  ;;  %v244_v14 = vld [vmem:[%s656_s6] sm:$0xff]  ;;  %v245_v15 = vld [vmem:[%s656_s6 + $0x8] sm:$0xff]  ;;  %vm518_vm3 = vmmov 0   ;;  %s519_s21 = smov [#allocation2]   ;;  %vm401_vm4 = vcmask 1040384  }
   0xb   :  { %v246_v16 = vld [vmem:[%s656_s6 + $0x10] sm:$0xff]  ;;  %v247_v17 = vld [vmem:[%s656_s6 + $0x18] sm:$0xff]  ;;  %v340_v18 = vld [vmem:[%s658_s8] sm:$0x3]  ;;  %s410_s1 = sshll.u32 %s519_s21, 4  ;;  %s411_s1 = int_to_ptr.vmem [resolvable:$true] %s410_s1 }
   0xc   :  { %150 = vperm.xlu0 %480, %v144_v10   ;;  %v484_v19 = vld [vmem:[%s653_s3] sm:$0xff]   ;;  %v485_v38 = vld [vmem:[%s653_s3 + $0x8] sm:$0xff]   ;;  %p497_p1 = scmp.lt.s32.totalorder %s411_s1, %s411_s1 }
   0xd   :  { %155 = vperm.xlu1 %481, %v145_v11   ;;  %455 = vmatprep.mubr.msk.bf16.mxu1 %vm178_vm2, %v484_v19  ;;  %v486_v39 = vld [vmem:[%s655_s5] sm:$0xff]   ;;  %v487_v58 = vld [vmem:[%s655_s5 + $0x8] sm:$0xff]  }
   0xe   :  { %463 = vmatprep.mubr.msk.bf16.mxu0 %vm178_vm2, %v486_v39 }
  0x10   :  { %160 = vperm.xlu0 %480, %v146_v12  }
  0x11   :  { %165 = vperm.xlu1 %481, %v147_v13  }
  0x14   :  { %250 = vperm.xlu0 %480, %v244_v14   ;;  %v337_v14 = vld [vmem:[%s657_s7] sm:$0x1]  ;;  %s492_s7 = scalar_lea.vmem %s411_s1, 32 }
  0x15   :  { %255 = vperm.xlu1 %481, %v245_v15   ;;  %p493_p0 = scmp.ne.s32.totalorder %s411_s1, %s492_s7  ;;  %p498_p2 = scmp.lt.s32.totalorder %s492_s7, %s492_s7 }
  0x17   :  { %p499_p3 = por %p498_p2, %p497_p1 }
  0x18   :  { %260 = vperm.xlu0 %480, %v246_v16  }
  0x19   :  { %265 = vperm.xlu1 %481, %v247_v17   ;;  %p500_p4 = pnand %p499_p3, %p493_p0 }
  0x1c   :  { %343 = vperm.xlu0 %480, %v340_v18  }
  0x81   :  { %v57_v20 = vpop.permute.xlu1 %56 }
  0x83   :  { %v47_v21 = vpop.permute.xlu0 %46 }
  0x87   :  { %v52_v28 = vpop.permute.xlu0 %51 }
  0x88   :  { %v62_v25 = vpop.permute.xlu1 %61 }
  0x8b   :  { %v151_v40 = vpop.permute.xlu0 %150 }
  0x8c   :  { %v156_v41 = vpop.permute.xlu1 %155 }
  0x8f   :  { %v161_v42 = vpop.permute.xlu0 %160 }
  0x90   :  { %v166_v46 = vpop.permute.xlu1 %165 }
  0x93   :  { %v251_v60 = vpop.permute.xlu0 %250 }
  0x94   :  { %v256_v61 = vpop.permute.xlu1 %255 }
  0x97   :  { %v261_v62 = vpop.permute.xlu0 %260 }
  0x98   :  { %v266_v2 = vpop.permute.xlu1 %265 }
  0x9b   :  { %v344_v15 = vpop.permute.xlu0 %343 }
  0xdb   :  { %v449_v22 = vpop.f32.mrb[0].mxu0 }
  0xdc   :  { %v128_v23 = vadd.f32 %v449_v22, %v57_v20  ;;  %v119_v24 = vpop.f32.mrb[1].mxu0 }
  0xdd   :  { %v120_v26 = vadd.f32 %v119_v24, %v47_v21  ;;  %v450_v27 = vpop.f32.mrb[2].mxu0 }
  0xde   :  { %v131_v29 = vadd.f32 %v450_v27, %v62_v25  ;;  %v122_v30 = vpop.f32.mrb[3].mxu0  ;;  %v136_v32 = vmax.f32 %v128_v23, 0.0 }
  0xdf   :  { %v123_v31 = vadd.f32 %v122_v30, %v52_v28  ;;  %v134_v34 = vmax.f32 %v120_v26, 0.0 }
  0xe0   :  { %v137_v33 = vmax.f32 %v131_v29, 0.0 }
  0xe1   :  { %v135_v35 = vmax.f32 %v123_v31, 0.0 }
  0xe2   :  { %v143_v36 = vpack.c.bf16 %v137_v33, %v136_v32 }
  0xe3   :  { %v142_v37 = vpack.c.bf16 %v135_v35, %v134_v34 }
  0xe5   :  { %451 = vmatprep.subr.bf16.mxu1 %v142_v37 }
  0xe6   :  { %452 = vmatpush3.bf16.msra.mxu1 %v142_v37 }
  0xe7   :  { %453 = vmatprep.subr.bf16.mxu1 %v143_v36 }
  0xea   :  { %454 = vmatpush3.bf16.msra.mxu1 %v143_v36 }
  0xeb   :  { %467 = vmatprep.subr.bf16.mxu1 %v517_v59 }
  0xed   :  { %456 = vmatmul.mubr.msk.bf16.vlgmr.msra.gmra.mrb[0].mxu1 %vm178_vm2, %v485_v38 }
  0xee   :  { %471 = vmatprep.mubr.msk.bf16.mxu1 %vm518_vm3, %v517_v59 }
 0x1c0   :  { %v457_v43 = vpop.f32.mrb[0].mxu1 }
 0x1c1   :  { %v228_v44 = vadd.f32 %v457_v43, %v161_v42  ;;  %v219_v45 = vpop.f32.mrb[1].mxu1 }
 0x1c2   :  { %v220_v47 = vadd.f32 %v219_v45, %v151_v40  ;;  %v458_v48 = vpop.f32.mrb[2].mxu1 }
 0x1c3   :  { %v231_v49 = vadd.f32 %v458_v48, %v166_v46  ;;  %v222_v50 = vpop.f32.mrb[3].mxu1  ;;  %v236_v52 = vmax.f32 %v228_v44, 0.0 }
 0x1c4   :  { %v223_v51 = vadd.f32 %v222_v50, %v156_v41  ;;  %v234_v54 = vmax.f32 %v220_v47, 0.0 }
 0x1c5   :  { %v237_v53 = vmax.f32 %v231_v49, 0.0 }
 0x1c6   :  { %v235_v55 = vmax.f32 %v223_v51, 0.0 }
 0x1c7   :  { %v243_v56 = vpack.c.bf16 %v237_v53, %v236_v52 }
 0x1c8   :  { %v242_v57 = vpack.c.bf16 %v235_v55, %v234_v54 }
 0x1ca   :  { %459 = vmatprep.subr.bf16.mxu0 %v242_v57 }
 0x1cb   :  { %460 = vmatpush3.bf16.msra.mxu0 %v242_v57 }
 0x1cc   :  { %461 = vmatprep.subr.bf16.mxu0 %v243_v56 }
 0x1cf   :  { %462 = vmatpush3.bf16.msra.mxu0 %v243_v56 }
 0x1d2   :  { %464 = vmatmul.mubr.msk.bf16.vlgmr.msra.gmra.mrb[4].mxu0 %vm178_vm2, %v487_v58 }
 0x2a5   :  { %v465_v63 = vpop.f32.mrb[4].mxu0 }
 0x2a6   :  { %v327_v0 = vadd.f32 %v465_v63, %v261_v62  ;;  %v318_v1 = vpop.f32.mrb[5].mxu0 }
 0x2a7   :  { %v319_v3 = vadd.f32 %v318_v1, %v251_v60  ;;  %v466_v4 = vpop.f32.mrb[6].mxu0 }
 0x2a8   :  { %v330_v5 = vadd.f32 %v466_v4, %v266_v2  ;;  %v321_v6 = vpop.f32.mrb[7].mxu0  ;;  %v335_v8 = vmax.f32 %v327_v0, 0.0 }
 0x2a9   :  { %v322_v7 = vadd.f32 %v321_v6, %v256_v61  ;;  %v333_v10 = vmax.f32 %v319_v3, 0.0 }
 0x2aa   :  { %v336_v9 = vmax.f32 %v330_v5, 0.0 }
 0x2ab   :  { %v334_v11 = vmax.f32 %v322_v7, 0.0 }
 0x2ac   :  { %v339_v12 = vpack.c.bf16 %v336_v9, %v335_v8 }
 0x2ad   :  { %v338_v13 = vpack.c.bf16 %v334_v11, %v333_v10 }
 0x2af   :  { %468 = vmatpush3.bf16.msra.mxu1 %v338_v13 }
 0x2b0   :  { %469 = vmatprep.subr.bf16.mxu1 %v517_v59 }
 0x2b3   :  { %470 = vmatpush3.bf16.msra.mxu1 %v339_v12 }
 0x2b6   :  { %472 = vmatmul.mubr.msk.bf16.vlgmr.msra.gmra.mrb[4].mxu1 %vm178_vm2, %v337_v14 }
 0x389   :  { %v383_v16 = vpop.f32.mrb[4].mxu1 }
 0x38a   :  { %v384_v17 = vadd.f32 %v383_v16, %v344_v15  ;;  %v473_v18 = vpop.f32.mrb[5].mxu1 }
 0x38b   :  { %v386_v19 = vpop.f32.mrb[6].mxu1 }
 0x38c   :  { %v390_v20 = vrot.slane %v384_v17, 1  ;;  %v474_v21 = vpop.f32.mrb[7].mxu1 }
 0x38e   :  { %v392_v22 = vsub.f32 %v384_v17, %v390_v20 }
 0x390   :  { %v393_v23 = vmul.f32 1.442695, %v392_v22 }
 0x392   :  { %488 = vpow2.f32 %v393_v23 }
 0x39c   :  { %v489_v24 = vpop.eup %488 }
 0x39d   :  { %v395_v25 = vadd.f32 1.0, %v489_v24 }
 0x39f   :  { %490 = vrcp.f32 %v395_v25 }
 0x3a9   :  { %v491_v26 = vpop.eup %490 }
 0x3aa   :  { %v397_v27 = vsub.f32 1.0, %v491_v26  ;;  %v399_v28 = vrot.slane %v491_v26, 7 }
 0x3ac   :  { %v402_v29 = vsel %vm401_vm4, %v397_v27, %v399_v28 }
 0x3ad   :  { %403 = vst [vmem:[#allocation2] sm:$0x3] %v402_v29 }
 0x3ae   :  { %503 = shalt.err (!%p500_p4)
}
 0x3af   :  { %s504_s24 = scalar_lea.hbm %s659_s9, 32 }
 0x3b0   :  { %p505_p5 = scmp.ne.s32.totalorder %s659_s9, %s504_s24  ;;  %p508_p6 = scmp.lt.u32.totalorder %s504_s24, %s659_s9 }
 0x3b2   :  { %p510_p7 = pnand %p508_p6, %p505_p5 }
 0x3b4   :  { %513 = shalt.err (!%p510_p7)
}
 0x3b5   :  { %413 = dma.vmem_to_hbm [thread:$0]  %s411_s1, 32, %s659_s9, [#allocation3]  }
 0x3b6   :  { %514 = dma.done.wait [#allocation3], 32  }
 0x3b7   :  { %515 = vsyncadd [#allocation3], 4294967264 }
 0x3b8   :  { %417 = vsyncpa [#allocation3], 1 }

</bundles_post_ra>
